<compile_context>
chip_gen: v7x
topology: tpu7x:2x2x1
jax: 0.10.0
libtpu: 0.0.40
codegen_flags: <defaults>
</compile_context>

<pallas_src>
import functools

import jax
import jax.numpy as jnp
from jax import lax
from jax.experimental import pallas as pl
from jax.experimental.pallas import tpu as pltpu


def _round_up(v, m):
    return (v + m - 1) // m * m


def _gcn_kernel(a_t_ref, x_ref, w1_ref, b1_ref, w2_ref, b2_ref, o_ref):
    """Fused 2-layer GCN for one graph.

    a_t_ref: (1, Np, Np) f32   transposed adjacency: a_t[c, r] = A[r, c]
    x_ref:   (1, Np, Kp) bf16  node features (zero padded)
    w1_ref:  (Hp, Kp)    bf16  conv1 weight, torch (out, in) layout
    b1_ref:  (1, Hp)     f32   conv1 bias
    w2_ref:  (Op, Hp)    bf16  conv2 weight, torch (out, in) layout
    b2_ref:  (1, Op)     f32   conv2 bias
    o_ref:   (1, Np, Op) f32   output node features
    """
    n = a_t_ref.shape[1]
    m = a_t_ref[0]                                            # (N, N) f32, m[c, r] = A[r, c]

    # add_remaining_self_loops: diagonal entries that are zero become 1.
    rr = lax.broadcasted_iota(jnp.int32, (n, n), 0)
    cc = lax.broadcasted_iota(jnp.int32, (n, n), 1)
    on_diag = rr == cc
    m_hat = jnp.where(jnp.logical_and(on_diag, m == 0.0), 1.0, m)

    # deg[i] = sum_j A_hat[j, i] = sum_j m_hat[i, j]  (row sums of the transposed A_hat)
    deg_col = jnp.sum(m_hat, axis=1, keepdims=True)           # (N, 1), deg as a column
    ones_row = jnp.ones((1, n), jnp.float32)
    deg_row = lax.dot_general(                                 # (1, N), same deg as a row
        ones_row, m_hat, (((1,), (1,)), ((), ())),
        preferred_element_type=jnp.float32)
    dinv_col = jnp.where(deg_col == 0.0, 0.0, lax.rsqrt(deg_col))
    dinv_row = jnp.where(deg_row == 0.0, 0.0, lax.rsqrt(deg_row))

    # t_hat[c, r] = deg[c]^-1/2 * A_hat[r, c] * deg[r]^-1/2   (normalized, transposed)
    t_hat = (dinv_col * m_hat * dinv_row).astype(jnp.bfloat16)

    # ---- layer 1: linear (X @ W1^T), aggregate, +bias, relu ----
    xw = lax.dot_general(x_ref[0], w1_ref[...], (((1,), (1,)), ((), ())),
                         preferred_element_type=jnp.float32)   # (N, Hp) f32
    h = jnp.dot(t_hat, xw.astype(jnp.bfloat16),
                preferred_element_type=jnp.float32)            # (N, Hp) f32
    h = jnp.maximum(h + b1_ref[...], 0.0)
    # dropout: eval-mode no-op.

    # ---- layer 2: linear (H @ W2^T), aggregate, +bias, relu ----
    hw = lax.dot_general(h.astype(jnp.bfloat16), w2_ref[...], (((1,), (1,)), ((), ())),
                         preferred_element_type=jnp.float32)   # (N, Op) f32
    out = jnp.dot(t_hat, hw.astype(jnp.bfloat16),
                  preferred_element_type=jnp.float32)          # (N, Op) f32
    out = jnp.maximum(out + b2_ref[...], 0.0)

    o_ref[0] = out.astype(o_ref.dtype)


def gcn_forward(edge_features, edge_weights, w1, b1, w2, b2):
    """JAX/Pallas equivalent of GCN.forward (eval mode).

    edge_features: (B, N, F_in) float node features
    edge_weights:  (B, N, N)    dense weighted adjacency matrices
    w1: (H, F_in), b1: (H,), w2: (F_out, H), b2: (F_out,)   torch nn.Linear layout
    Returns: (B, N, F_out) float32
    """
    B, N, Fin = edge_features.shape
    H = w1.shape[0]
    O = w2.shape[0]

    # Padding: nodes -> sublane multiple, features -> lane-dense 128 multiples.
    Np = _round_up(N, 8)
    Kp = _round_up(Fin, 128)
    Hp = _round_up(H, 128)
    Op = _round_up(O, 128)

    # bf16 activations/weights for the MXU, f32 adjacency + biases.
    x_p = jnp.zeros((B, Np, Kp), jnp.bfloat16)
    x_p = x_p.at[:, :N, :Fin].set(edge_features.astype(jnp.bfloat16))
    a_t = jnp.swapaxes(edge_weights.astype(jnp.float32), 1, 2)   # kernel consumes A^T
    a_p = jnp.zeros((B, Np, Np), jnp.float32).at[:, :N, :N].set(a_t)
    w1_p = jnp.zeros((Hp, Kp), jnp.bfloat16).at[:H, :Fin].set(w1.astype(jnp.bfloat16))
    b1_p = jnp.zeros((1, Hp), jnp.float32).at[0, :H].set(b1.astype(jnp.float32))
    w2_p = jnp.zeros((Op, Hp), jnp.bfloat16).at[:O, :H].set(w2.astype(jnp.bfloat16))
    b2_p = jnp.zeros((1, Op), jnp.float32).at[0, :O].set(b2.astype(jnp.float32))

    flops = 2 * B * Np * (Np * Hp + Kp * Hp + Np * Op + Hp * Op)
    bytes_accessed = (a_p.size * 4 + x_p.size * 2 + w1_p.size * 2 + w2_p.size * 2
                      + b1_p.size * 4 + b2_p.size * 4 + B * Np * Op * 4)

    out = pl.pallas_call(
        _gcn_kernel,
        out_shape=jax.ShapeDtypeStruct((B, Np, Op), jnp.float32),
        grid=(B,),
        in_specs=[
            pl.BlockSpec((1, Np, Np), lambda b: (b, 0, 0)),   # A^T  (per graph)
            pl.BlockSpec((1, Np, Kp), lambda b: (b, 0, 0)),   # X    (per graph)
            pl.BlockSpec((Hp, Kp), lambda b: (0, 0)),         # W1   (resident)
            pl.BlockSpec((1, Hp), lambda b: (0, 0)),          # b1
            pl.BlockSpec((Op, Hp), lambda b: (0, 0)),         # W2
            pl.BlockSpec((1, Op), lambda b: (0, 0)),          # b2
        ],
        out_specs=pl.BlockSpec((1, Np, Op), lambda b: (b, 0, 0)),
        compiler_params=pltpu.CompilerParams(
            dimension_semantics=("parallel",),
            vmem_limit_bytes=48 * 1024 * 1024,
        ),
        cost_estimate=pl.CostEstimate(
            flops=flops, transcendentals=B * Np, bytes_accessed=bytes_accessed),
    )(a_p, x_p, w1_p, b1_p, w2_p, b2_p)

    return out[:, :N, :O]


def gcn_reference(x, adj, w1, b1, w2, b2):
    """Pure-JAX f32 reference with the same (PyG GCNConv) semantics."""
    n = adj.shape[-1]
    eye = jnp.eye(n, dtype=jnp.bool_)
    a_hat = jnp.where(eye[None, :, :] & (adj == 0.0), 1.0, adj)
    deg = a_hat.sum(axis=1)                                   # (B, N), deg[c] = sum_r A_hat[r, c]
    dinv = jnp.where(deg == 0.0, 0.0, deg ** -0.5)
    s = dinv[:, :, None] * a_hat * dinv[:, None, :]           # s[b, r, c]

    def layer(feat, w, b):
        xw = feat @ w.T
        agg = jnp.einsum("brc,brf->bcf", s, xw)
        return jax.nn.relu(agg + b)

    h = layer(x, w1, b1)
    return layer(h, w2, b2)


if __name__ == "__main__":
    # Small shapes implied by the module: batch=2 graphs, 16 nodes,
    # input_dim=4, hidden_dim=32, output_dim=8.
    batch, num_nodes = 2, 16
    input_dim, hidden_dim, output_dim = 4, 32, 8

    key = jax.random.PRNGKey(0)
    kx, ka, km, k1, k2 = jax.random.split(key, 5)

    edge_features = jax.random.normal(kx, (batch, num_nodes, input_dim), dtype=jnp.float32)

    # Random symmetric weighted adjacency, zero diagonal (self loops added by the conv).
    raw = jax.random.uniform(ka, (batch, num_nodes, num_nodes), dtype=jnp.float32)
    mask = (jax.random.uniform(km, (batch, num_nodes, num_nodes)) > 0.5).astype(jnp.float32)
    adj = raw * mask
    adj = 0.5 * (adj + jnp.swapaxes(adj, 1, 2))
    adj = adj * (1.0 - jnp.eye(num_nodes, dtype=jnp.float32))

    def linear_init(k, out_dim, in_dim):
        bound = 1.0 / (in_dim ** 0.5)
        kw, kb = jax.random.split(k)
        w = jax.random.uniform(kw, (out_dim, in_dim), minval=-bound, maxval=bound,
                               dtype=jnp.float32)
        b = jax.random.uniform(kb, (out_dim,), minval=-bound, maxval=bound,
                               dtype=jnp.float32)
        return w, b

    w1, b1 = linear_init(k1, hidden_dim, input_dim)
    w2, b2 = linear_init(k2, output_dim, hidden_dim)

    gcn = jax.jit(gcn_forward)
    out = gcn(edge_features, adj, w1, b1, w2, b2)
    out = jax.block_until_ready(out)

    ref = gcn_reference(edge_features, adj, w1, b1, w2, b2)

    assert out.shape == (batch, num_nodes, output_dim), out.shape
    # bf16 MXU inputs with f32 accumulation -> loose-ish tolerance vs. the f32 reference.
    assert jnp.allclose(out, ref, atol=5e-2, rtol=5e-2), float(jnp.max(jnp.abs(out - ref)))

    print("KERNEL_OK")
</pallas_src>

<mosaic_0001>
module attributes {stable_mosaic.version = 11 : i64} {
  func.func @_gcn_kernel(%arg0: i32, %arg1: memref<1x16x16xf32, #tpu.memory_space<vmem>>, %arg2: memref<1x16x128xbf16, #tpu.memory_space<vmem>>, %arg3: memref<128x128xbf16, #tpu.memory_space<vmem>>, %arg4: memref<1x128xf32, #tpu.memory_space<vmem>>, %arg5: memref<128x128xbf16, #tpu.memory_space<vmem>>, %arg6: memref<1x128xf32, #tpu.memory_space<vmem>>, %arg7: memref<1x16x128xf32, #tpu.memory_space<vmem>>) attributes {dimension_semantics = [#tpu.dimension_semantics<parallel>], iteration_bounds = array<i64: 2>, scalar_prefetch = 0 : i64, scratch_operands = 0 : i64, tpu.core_type = #tpu.core_type<tc>, window_params = [{transform_indices = @transform_0, window_bounds = array<i64: 1, 16, 16>}, {transform_indices = @transform_1, window_bounds = array<i64: 1, 16, 128>}, {pipeline_mode = #tpu.pipeline_mode<synchronous>, transform_indices = @transform_2, window_bounds = array<i64: 128, 128>}, {pipeline_mode = #tpu.pipeline_mode<synchronous>, transform_indices = @transform_3, window_bounds = array<i64: 1, 128>}, {pipeline_mode = #tpu.pipeline_mode<synchronous>, transform_indices = @transform_4, window_bounds = array<i64: 128, 128>}, {pipeline_mode = #tpu.pipeline_mode<synchronous>, transform_indices = @transform_5, window_bounds = array<i64: 1, 128>}, {transform_indices = @transform_6, window_bounds = array<i64: 1, 16, 128>}]} {
    %c0 = arith.constant 0 : index
    %c0_0 = arith.constant 0 : index
    %c0_1 = arith.constant 0 : index
    %0 = vector.load %arg1[%c0, %c0_0, %c0_1] : memref<1x16x16xf32, #tpu.memory_space<vmem>>, vector<1x16x16xf32>
    %1 = vector.shape_cast %0 : vector<1x16x16xf32> to vector<16x16xf32>
    %2 = tpu.iota {dimensions = array<i32: 0>} : vector<16x16xi32>
    %3 = tpu.iota {dimensions = array<i32: 1>} : vector<16x16xi32>
    %4 = arith.cmpi eq, %2, %3 : vector<16x16xi32>
    %cst = arith.constant 0.000000e+00 : f32
    %5 = vector.broadcast %cst : f32 to vector<16x16xf32>
    %6 = arith.cmpf oeq, %1, %5 : vector<16x16xf32>
    %7 = arith.andi %4, %6 : vector<16x16xi1>
    %cst_2 = arith.constant 1.000000e+00 : f32
    %8 = vector.broadcast %cst_2 : f32 to vector<16x16xf32>
    %9 = arith.select %7, %8, %1 : vector<16x16xi1>, vector<16x16xf32>
    %cst_3 = arith.constant dense<0.000000e+00> : vector<16xf32>
    %10 = vector.multi_reduction <add>, %9, %cst_3 [1] : vector<16x16xf32> to vector<16xf32>
    %11 = vector.shape_cast %10 : vector<16xf32> to vector<16x1xf32>
    %cst_4 = arith.constant 1.000000e+00 : f32
    %12 = vector.broadcast %cst_4 : f32 to vector<1x16xf32>
    %cst_5 = arith.constant dense<0.000000e+00> : vector<1x16xf32>
    %13 = tpu.matmul %12, %9, %cst_5 {dimension_numbers = #tpu.dot_dimension_numbers<[1], [1], [0], [0], [0, 0, 1, 0], [], []>} : vector<1x16xf32>, vector<16x16xf32>, vector<1x16xf32> -> vector<1x16xf32>
    %cst_6 = arith.constant 0.000000e+00 : f32
    %14 = vector.broadcast %cst_6 : f32 to vector<16x1xf32>
    %15 = arith.cmpf oeq, %11, %14 : vector<16x1xf32>
    %16 = math.rsqrt %11 : vector<16x1xf32>
    %cst_7 = arith.constant 0.000000e+00 : f32
    %17 = vector.broadcast %cst_7 : f32 to vector<16x1xf32>
    %18 = arith.select %15, %17, %16 : vector<16x1xi1>, vector<16x1xf32>
    %cst_8 = arith.constant 0.000000e+00 : f32
    %19 = vector.broadcast %cst_8 : f32 to vector<1x16xf32>
    %20 = arith.cmpf oeq, %13, %19 : vector<1x16xf32>
    %21 = math.rsqrt %13 : vector<1x16xf32>
    %cst_9 = arith.constant 0.000000e+00 : f32
    %22 = vector.broadcast %cst_9 : f32 to vector<1x16xf32>
    %23 = arith.select %20, %22, %21 : vector<1x16xi1>, vector<1x16xf32>
    %24 = vector.broadcast %18 : vector<16x1xf32> to vector<16x16xf32>
    %25 = arith.mulf %24, %9 : vector<16x16xf32>
    %26 = vector.broadcast %23 : vector<1x16xf32> to vector<16x16xf32>
    %27 = arith.mulf %25, %26 : vector<16x16xf32>
    %28 = arith.truncf %27 : vector<16x16xf32> to vector<16x16xbf16>
    %c0_10 = arith.constant 0 : index
    %c0_11 = arith.constant 0 : index
    %c0_12 = arith.constant 0 : index
    %29 = vector.load %arg2[%c0_10, %c0_11, %c0_12] : memref<1x16x128xbf16, #tpu.memory_space<vmem>>, vector<1x16x128xbf16>
    %30 = vector.shape_cast %29 : vector<1x16x128xbf16> to vector<16x128xbf16>
    %c0_13 = arith.constant 0 : index
    %c0_14 = arith.constant 0 : index
    %31 = vector.load %arg3[%c0_13, %c0_14] : memref<128x128xbf16, #tpu.memory_space<vmem>>, vector<128x128xbf16>
    %cst_15 = arith.constant dense<0.000000e+00> : vector<16x128xf32>
    %32 = tpu.matmul %30, %31, %cst_15 {dimension_numbers = #tpu.dot_dimension_numbers<[1], [1], [0], [0], [0, 0, 1, 0], [], []>} : vector<16x128xbf16>, vector<128x128xbf16>, vector<16x128xf32> -> vector<16x128xf32>
    %33 = arith.truncf %32 : vector<16x128xf32> to vector<16x128xbf16>
    %cst_16 = arith.constant dense<0.000000e+00> : vector<16x128xf32>
    %34 = tpu.matmul %28, %33, %cst_16 {dimension_numbers = #tpu.dot_dimension_numbers<[1], [0], [0], [1], [0, 0, 1, 1], [], []>} : vector<16x16xbf16>, vector<16x128xbf16>, vector<16x128xf32> -> vector<16x128xf32>
    %c0_17 = arith.constant 0 : index
    %c0_18 = arith.constant 0 : index
    %35 = vector.load %arg4[%c0_17, %c0_18] : memref<1x128xf32, #tpu.memory_space<vmem>>, vector<1x128xf32>
    %36 = vector.broadcast %35 : vector<1x128xf32> to vector<16x128xf32>
    %37 = arith.addf %34, %36 : vector<16x128xf32>
    %cst_19 = arith.constant 0.000000e+00 : f32
    %38 = vector.broadcast %cst_19 : f32 to vector<16x128xf32>
    %39 = arith.maximumf %37, %38 : vector<16x128xf32>
    %40 = arith.truncf %39 : vector<16x128xf32> to vector<16x128xbf16>
    %c0_20 = arith.constant 0 : index
    %c0_21 = arith.constant 0 : index
    %41 = vector.load %arg5[%c0_20, %c0_21] : memref<128x128xbf16, #tpu.memory_space<vmem>>, vector<128x128xbf16>
    %cst_22 = arith.constant dense<0.000000e+00> : vector<16x128xf32>
    %42 = tpu.matmul %40, %41, %cst_22 {dimension_numbers = #tpu.dot_dimension_numbers<[1], [1], [0], [0], [0, 0, 1, 0], [], []>} : vector<16x128xbf16>, vector<128x128xbf16>, vector<16x128xf32> -> vector<16x128xf32>
    %43 = arith.truncf %42 : vector<16x128xf32> to vector<16x128xbf16>
    %cst_23 = arith.constant dense<0.000000e+00> : vector<16x128xf32>
    %44 = tpu.matmul %28, %43, %cst_23 {dimension_numbers = #tpu.dot_dimension_numbers<[1], [0], [0], [1], [0, 0, 1, 1], [], []>} : vector<16x16xbf16>, vector<16x128xbf16>, vector<16x128xf32> -> vector<16x128xf32>
    %c0_24 = arith.constant 0 : index
    %c0_25 = arith.constant 0 : index
    %45 = vector.load %arg6[%c0_24, %c0_25] : memref<1x128xf32, #tpu.memory_space<vmem>>, vector<1x128xf32>
    %46 = vector.broadcast %45 : vector<1x128xf32> to vector<16x128xf32>
    %47 = arith.addf %44, %46 : vector<16x128xf32>
    %cst_26 = arith.constant 0.000000e+00 : f32
    %48 = vector.broadcast %cst_26 : f32 to vector<16x128xf32>
    %49 = arith.maximumf %47, %48 : vector<16x128xf32>
    %c0_27 = arith.constant 0 : index
    %c0_28 = arith.constant 0 : index
    %c0_29 = arith.constant 0 : index
    %50 = vector.load %arg7[%c0_27, %c0_28, %c0_29] : memref<1x16x128xf32, #tpu.memory_space<vmem>>, vector<1x16x128xf32>
    %51 = vector.shape_cast %50 : vector<1x16x128xf32> to vector<16x128xf32>
    %52 = vector.shape_cast %49 : vector<16x128xf32> to vector<1x16x128xf32>
    tpu.vector_store %arg7[%c0_27, %c0_28, %c0_29], %52 {strides = array<i32>} : memref<1x16x128xf32, #tpu.memory_space<vmem>>, vector<1x16x128xf32>,
    return
  }
  func.func @transform_0(%arg0: i32) -> (i32, i32, i32) {
    %c0_i32 = arith.constant 0 : i32
    %c0_i32_0 = arith.constant 0 : i32
    %c0_i32_1 = arith.constant 0 : i32
    return %arg0, %c0_i32, %c0_i32_0 : i32, i32, i32
  }
  func.func @transform_1(%arg0: i32) -> (i32, i32, i32) {
    %c0_i32 = arith.constant 0 : i32
    %c0_i32_0 = arith.constant 0 : i32
    %c0_i32_1 = arith.constant 0 : i32
    return %arg0, %c0_i32, %c0_i32_0 : i32, i32, i32
  }
  func.func @transform_2(%arg0: i32) -> (i32, i32) {
    %c0_i32 = arith.constant 0 : i32
    %c0_i32_0 = arith.constant 0 : i32
    %c0_i32_1 = arith.constant 0 : i32
    return %c0_i32, %c0_i32_0 : i32, i32
  }
  func.func @transform_3(%arg0: i32) -> (i32, i32) {
    %c0_i32 = arith.constant 0 : i32
    %c0_i32_0 = arith.constant 0 : i32
    %c0_i32_1 = arith.constant 0 : i32
    return %c0_i32, %c0_i32_0 : i32, i32
  }
  func.func @transform_4(%arg0: i32) -> (i32, i32) {
    %c0_i32 = arith.constant 0 : i32
    %c0_i32_0 = arith.constant 0 : i32
    %c0_i32_1 = arith.constant 0 : i32
    return %c0_i32, %c0_i32_0 : i32, i32
  }
  func.func @transform_5(%arg0: i32) -> (i32, i32) {
    %c0_i32 = arith.constant 0 : i32
    %c0_i32_0 = arith.constant 0 : i32
    %c0_i32_1 = arith.constant 0 : i32
    return %c0_i32, %c0_i32_0 : i32, i32
  }
  func.func @transform_6(%arg0: i32) -> (i32, i32, i32) {
    %c0_i32 = arith.constant 0 : i32
    %c0_i32_0 = arith.constant 0 : i32
    %c0_i32_1 = arith.constant 0 : i32
    return %arg0, %c0_i32, %c0_i32_0 : i32, i32, i32
  }
}

</mosaic_0001>

<bundles_post_ra>
// kernel: gcn_forward.1
= control target key start
LH: loop header
LB: loop body
LE: loop exit
PB: predicated region body
PF: predicated region fallthrough
CT: control target
= control target key end

     0   :  { %s995_s21 = smov 0   ;;  %s1120_s0 = inlined_call_operand.vmem [shape: f32[2,16,16], index: 0, kind: input, shape index: {}]   ;;  %s1121_s1 = inlined_call_operand.vmem [shape: bf16[2,16,128], index: 1, kind: input, shape index: {}]   ;;  %s1122_s2 = inlined_call_operand.vmem [shape: bf16[128,128], index: 2, kind: input, shape index: {}]   ;;  %s1123_s3 = inlined_call_operand.vmem [shape: f32[1,128], index: 3, kind: input, shape index: {}]   ;;  %s1124_s4 = inlined_call_operand.vmem [shape: bf16[128,128], index: 4, kind: input, shape index: {}]   ;;  %s1125_s5 = inlined_call_operand.vmem [shape: f32[1,128], index: 5, kind: input, shape index: {}]   ;;  %s1126_s6 = inlined_call_operand.vmem [shape: f32[2,16,128], index: 6, kind: output, shape index: {}]  }
   0x1 LB: > { %s785_s22 = sadd.s32 4294967295, %s954_s21   ;;  %p789_p0 = scmp.ge.s32.totalorder %s954_s21, 1  ;;  %s954_s21 = sphi %s995_s21, %s16_s21  }
   0x2   : > { %p222_p1 = scmp.lt.s32.totalorder %s954_s21, 3 }
   0x4   : > { %p223_p2 = pnand %p789_p0, %p222_p1 }
   0x5   : > { %v925_v0 = vld [vmem:[%s1122_s2] sm:$0xff] (!%p223_p2)   ;;  %v275_v1 = vlaneseq (!%p223_p2)  ;;  %v956_v2 = vmov (!%p223_p2), 0.0   ;;  %v957_v3 = vmov (!%p223_p2), 0.0|0.0   ;;  %p257_p3 = scmp.lt.s32.totalorder (!%p223_p2), %s785_s22, 1  ;;  %v926_v7 = vld [vmem:[%s1122_s2 + $0x8] sm:$0xff] (!%p223_p2)   ;;  %vm958_vm0 = vmmov (!%p223_p2), 0  }
   0x6   : > { %226 = sbr.rel (%p223_p2) target bundleno = 947 (0x3b3), region = 44  ;;  %857 = vmatprep.subr.bf16.mxu1 (!%p223_p2), %v956_v2  ;;  %909 = vmatprep.subr.bf16.mxu0 (!%p223_p2), %v957_v3  ;;  %vm288_vm5 = vcmask (!%p223_p2), 130048   ;;  %v927_v13 = vld [vmem:[%s1122_s2 + $0x10] sm:$0xff] (!%p223_p2)   ;;  %v928_v16 = vld [vmem:[%s1122_s2 + $0x18] sm:$0xff] (!%p223_p2)   ;;  %v959_v17 = vmov (!%p223_p2), 1.0   ;;  %v929_v18 = vld [vmem:[%s1122_s2 + $0x20] sm:$0xff] (!%p223_p2)  }
   0x7   : > { %858 = vmatpush3.bf16.xpose.msra.mxu1 (!%p223_p2), %v925_v0  ;;  %v1008_v4 = vshrl.u32 (!%p223_p2), %v275_v1, 7  ;;  %v279_v5 = vand.u32 (!%p223_p2), 127, %v275_v1  ;;  %854 = vmatprep.mubr.msk.f32.mxu0 (!%p223_p2), %vm958_vm0, %v956_v2  ;;  %vm911_vm8 = vmpackc.low (!%p223_p2), %vm288_vm5, %vm288_vm5  ;;  %v930_v19 = vld [vmem:[%s1122_s2 + $0x28] sm:$0xff] (!%p223_p2)   ;;  %v931_v20 = vld [vmem:[%s1122_s2 + $0x30] sm:$0xff] (!%p223_p2)  }
   0x8   : > { %859 = vmatprep.subr.bf16.mxu1 (!%p223_p2), %v956_v2  ;;  %873 = vmatprep.mubr.msk.bf16.mxu1 (!%p223_p2), %vm958_vm0, %v956_v2  ;;  %v932_v21 = vld [vmem:[%s1122_s2 + $0x38] sm:$0xff] (!%p223_p2)   ;;  %v934_v45 = vld [vmem:[%s1124_s4] sm:$0xff] (!%p223_p2)   ;;  %v935_v46 = vld [vmem:[%s1124_s4 + $0x8] sm:$0xff] (!%p223_p2)  }
   0x9   : > { %v277_v6 = vadd.s32 (!%p223_p2), 8, %v1008_v4  ;;  %vm280_vm1 = vcmp.eq.s32.totalorder (!%p223_p2), %v1008_v4, %v279_v5  ;;  %v387_v30 = vsub.s32 (!%p223_p2), 0, %v1008_v4  ;;  %v936_v47 = vld [vmem:[%s1124_s4 + $0x10] sm:$0xff] (!%p223_p2)   ;;  %v937_v48 = vld [vmem:[%s1124_s4 + $0x18] sm:$0xff] (!%p223_p2)   ;;  %v938_v49 = vld [vmem:[%s1124_s4 + $0x20] sm:$0xff] (!%p223_p2)  }
   0xa   : > { %v939_v50 = vld [vmem:[%s1124_s4 + $0x28] sm:$0xff] (!%p223_p2)   ;;  %v940_v51 = vld [vmem:[%s1124_s4 + $0x30] sm:$0xff] (!%p223_p2)   ;;  %v941_v52 = vld [vmem:[%s1124_s4 + $0x38] sm:$0xff] (!%p223_p2)  }
   0xb   : > { %vm281_vm2 = vcmp.eq.s32.totalorder (!%p223_p2), %v277_v6, %v279_v5  ;;  %v808_v53 = vld [vmem:[%s1123_s3] ss:$0 sm:$0xff] (!%p223_p2) }
   0xc   : > { %v818_v4 = vld [vmem:[%s1125_s5] ss:$0 sm:$0xff] (!%p223_p2) }
   0xd   : > { %s1128_s22 = smov (!%p257_p3, %s785_s22), 1 }
   0xe   : > { %s822_s27 = sshll.u32 %s1128_s22, 4  ;;  %s823_s7 = sshll.u32 %s1128_s22, 3 }
   0xf   : > { %s261_s30 = scalar_lea.vmem %s1120_s0, %s822_s27  ;;  %s1031_s10 = scalar_lea.vmem %s1121_s1, %s823_s7  ;;  %860 = vmatpush3.bf16.xpose.msra.mxu1 %v926_v7 }
  0x10   : > { %v273_v8 = vld [vmem:[%s261_s30] sm:$0xff]  ;;  %v274_v9 = vld [vmem:[%s261_s30 + $0x8] sm:$0xff]  ;;  %861 = vmatprep.subr.bf16.mxu1 %v956_v2  ;;  %s271_s26 = scalar_lea.vmem %s1126_s6, %s822_s27 }
  0x11   : > { %vm282_vm3 = vcmp.eq.f32.partialorder %v273_v8, 0.0  ;;  %vm283_vm4 = vcmp.eq.f32.partialorder %v274_v9, 0.0  ;;  %v933_v22 = vld [vmem:[%s1031_s10] sm:$0xff]  }
  0x12   : > { %vm284_vm6 = vmand %vm280_vm1, %vm282_vm3 }
  0x13   : > { %vm285_vm7 = vmand %vm281_vm2, %vm283_vm4  ;;  %v286_v10 = vsel %vm284_vm6, 1.0, %v273_v8 }
  0x14   : > { %v287_v11 = vsel %vm285_vm7, 1.0, %v274_v9  ;;  %v289_v12 = vsel %vm288_vm5, %v286_v10, 0.0 }
  0x15   : > { %v910_v14 = vpack.c.bf16 %v287_v11, %v286_v10  ;;  %290 = vadd.xlane.f32.xlu0 %v289_v12  ;;  %v292_v15 = vsel %vm288_vm5, %v287_v11, 0.0 }
  0x17   : > { %912 = vmatpush3.bf16.xpose.msk.msra.mxu0 %vm911_vm8, %v910_v14  ;;  %862 = vmatpush3.bf16.xpose.msra.mxu1 %v927_v13 }
  0x18   : > { %877 = vmatprep.subr.bf16.mxu0 %v956_v2  ;;  %863 = vmatprep.subr.bf16.mxu1 %v956_v2 }
  0x19   : > { %293 = vadd.xlane.f32.xlu0 %v292_v15 }
  0x1e   : > { %855 = vmatmul.mubr.msk.f32.vlgmr.msra.gmra.mrb[0].mxu0 %vm288_vm5, %v959_v17 }
  0x1f   : > { %879 = vmatprep.mubr.msk.bf16.mxu0 %vm958_vm0, %v956_v2  ;;  %864 = vmatpush3.bf16.xpose.msra.mxu1 %v928_v16 }
  0x20   : > { %865 = vmatprep.subr.bf16.mxu1 %v956_v2 }
  0x27   : > { %866 = vmatpush3.bf16.xpose.msra.mxu1 %v929_v18 }
  0x28   : > { %867 = vmatprep.subr.bf16.mxu1 %v956_v2 }
  0x2f   : > { %868 = vmatpush3.bf16.xpose.msra.mxu1 %v930_v19 }
  0x30   : > { %869 = vmatprep.subr.bf16.mxu1 %v956_v2 }
  0x37   : > { %870 = vmatpush3.bf16.xpose.msra.mxu1 %v931_v20 }
  0x38   : > { %871 = vmatprep.subr.bf16.mxu1 %v956_v2 }
  0x3f   : > { %872 = vmatpush3.bf16.xpose.msra.mxu1 %v932_v21 }
  0x40   : > { %903 = vmatprep.subr.bf16.mxu1 %v956_v2 }
  0x46   : > { %874 = vmatmul.mubr.bf16.vlgmr.msra.gmra.mrb[0].mxu1 %v933_v22 }
  0x47   : > { %905 = vmatprep.mubr.msk.bf16.mxu1 %vm958_vm0, %v956_v2 }
  0xa2   : > { %v291_v25 = vpop.xlane.xlu0 %290 }
  0xa3   : > { %942 = vrsqrt.f32 %v291_v25  ;;  %vm374_vm9 = vcmp.eq.f32.partialorder %v291_v25, 0.0 }
  0xa6   : > { %v294_v26 = vpop.xlane.xlu0 %293 }
  0xa7   : > { %944 = vrsqrt.f32 %v294_v26  ;;  %vm375_vm11 = vcmp.eq.f32.partialorder %v294_v26, 0.0 }
  0xad   : > { %v943_v27 = vpop.eup %942 }
  0xae   : > { %v378_v31 = vsel %vm374_vm9, 0.0, %v943_v27 }
  0xaf   : > { %v383_v34 = vmul.f32 %v378_v31, %v286_v10 }
  0xb1   : > { %v945_v28 = vpop.eup %944 }
  0xb2   : > { %v379_v33 = vsel %vm375_vm11, 0.0, %v945_v28 }
  0xb3   : > { %v384_v36 = vmul.f32 %v379_v33, %v287_v11 }
  0xf1   : > { %v370_v23 = vpop.f32.mrb[0].mxu0 }
  0xf2   : > { %v856_v24 = vpop.f32.mrb[1].mxu0  ;;  %946 = vrsqrt.f32 %v370_v23  ;;  %vm380_vm10 = vcmp.eq.f32.partialorder %v370_v23, 0.0 }
  0xfc   : > { %v947_v29 = vpop.eup %946 }
  0xfd   : > { %v382_v32 = vsel %vm380_vm10, 0.0, %v947_v29 }
  0xfe   : > { %v388_v35 = vrot.slane %v382_v32, %v387_v30 }
 0x100   : > { %v389_v39 = vmul.f32 %v388_v35, %v383_v34  ;;  %v390_v40 = vmul.f32 %v388_v35, %v384_v36 }
 0x102   : > { %v391_v44 = vpack.c.bf16 %v390_v40, %v389_v39 }
 0x119   : > { %v498_v37 = vpop.f32.mrb[0].mxu1 }
 0x11a   : > { %v875_v38 = vpop.f32.mrb[1].mxu1 }
 0x11b   : > { %v501_v41 = vpop.f32.mrb[2].mxu1 }
 0x11c   : > { %v505_v42 = vpack.c.bf16 %v501_v41, %v498_v37  ;;  %v876_v43 = vpop.f32.mrb[3].mxu1 }
 0x11e   : > { %878 = vmatpush3.bf16.msra.mxu0 %v505_v42 }
 0x11f   : > { %883 = vmatprep.subr.bf16.mxu0 %v956_v2 }
 0x121   : > { %880 = vmatmul.mubr.msk.bf16.vlgmr.msra.gmra.mrb[4].mxu0 %vm288_vm5, %v391_v44 }
 0x122   : > { %899 = vmatprep.mubr.msk.bf16.mxu0 %vm958_vm0, %v956_v2 }
 0x127   : > { %884 = vmatpush3.bf16.xpose.msra.mxu0 %v934_v45 }
 0x128   : > { %885 = vmatprep.subr.bf16.mxu0 %v956_v2 }
 0x12f   : > { %886 = vmatpush3.bf16.xpose.msra.mxu0 %v935_v46 }
 0x130   : > { %887 = vmatprep.subr.bf16.mxu0 %v956_v2 }
 0x137   : > { %888 = vmatpush3.bf16.xpose.msra.mxu0 %v936_v47 }
 0x138   : > { %889 = vmatprep.subr.bf16.mxu0 %v956_v2 }
 0x13f   : > { %890 = vmatpush3.bf16.xpose.msra.mxu0 %v937_v48 }
 0x140   : > { %891 = vmatprep.subr.bf16.mxu0 %v956_v2 }
 0x147   : > { %892 = vmatpush3.bf16.xpose.msra.mxu0 %v938_v49 }
 0x148   : > { %893 = vmatprep.subr.bf16.mxu0 %v956_v2 }
 0x14f   : > { %894 = vmatpush3.bf16.xpose.msra.mxu0 %v939_v50 }
 0x150   : > { %895 = vmatprep.subr.bf16.mxu0 %v956_v2 }
 0x157   : > { %896 = vmatpush3.bf16.xpose.msra.mxu0 %v940_v51 }
 0x158   : > { %897 = vmatprep.subr.bf16.mxu0 %v956_v2 }
 0x15f   : > { %898 = vmatpush3.bf16.xpose.msra.mxu0 %v941_v52 }
 0x1f4   : > { %v550_v54 = vpop.f32.mrb[4].mxu0 }
 0x1f5   : > { %v551_v55 = vadd.f32 %v808_v53, %v550_v54  ;;  %v881_v56 = vpop.f32.mrb[5].mxu0 }
 0x1f6   : > { %v553_v57 = vpop.f32.mrb[6].mxu0 }
 0x1f7   : > { %v554_v58 = vadd.f32 %v808_v53, %v553_v57  ;;  %v882_v59 = vpop.f32.mrb[7].mxu0  ;;  %v557_v60 = vmax.f32 %v551_v55, 0.0 }
 0x1f9   : > { %v558_v61 = vmax.f32 %v554_v58, 0.0 }
 0x1fb   : > { %v559_v62 = vpack.c.bf16 %v558_v61, %v557_v60 }
 0x1fd   : > { %900 = vmatmul.mubr.bf16.vlgmr.msra.gmra.mrb[8].mxu0 %v559_v62 }
 0x2d0   : > { %v658_v63 = vpop.f32.mrb[8].mxu0 }
 0x2d1   : > { %v901_v0 = vpop.f32.mrb[9].mxu0 }
 0x2d2   : > { %v661_v1 = vpop.f32.mrb[10].mxu0 }
 0x2d3   : > { %v665_v2 = vpack.c.bf16 %v661_v1, %v658_v63  ;;  %v902_v3 = vpop.f32.mrb[11].mxu0 }
 0x2d5   : > { %904 = vmatpush3.bf16.msra.mxu1 %v665_v2 }
 0x2d8   : > { %906 = vmatmul.mubr.msk.bf16.vlgmr.msra.gmra.mrb[4].mxu1 %vm288_vm5, %v391_v44 }
 0x3ab   : > { %v707_v5 = vpop.f32.mrb[4].mxu1 }
 0x3ac   : > { %v708_v6 = vadd.f32 %v818_v4, %v707_v5  ;;  %v907_v7 = vpop.f32.mrb[5].mxu1 }
 0x3ad   : > { %v710_v8 = vpop.f32.mrb[6].mxu1 }
 0x3ae   : > { %v714_v9 = vmax.f32 %v708_v6, 0.0  ;;  %v711_v10 = vadd.f32 %v818_v4, %v710_v8  ;;  %v908_v11 = vpop.f32.mrb[7].mxu1 }
 0x3b0   : > { %716 = vst [vmem:[%s271_s26] sm:$0xff] %v714_v9  ;;  %v715_v12 = vmax.f32 %v711_v10, 0.0 }
 0x3b2   : > { %717 = vst [vmem:[%s271_s26 + $0x8] sm:$0xff] %v715_v12 }
 0x3b3 PF: > { %s16_s21 = sadd.s32 1, %s954_s21  }
 0x3b4   : > { %p13_p4 = scmp.ge.s32.totalorder %s16_s21, 4  }
 0x3b6   :  { %15 = sbr.rel (!%p13_p4) target bundleno = 1 (0x1), region = 77 }

</bundles_post_ra>
